<compile_context>
chip_gen: v6e
topology: v6e:2x2x1
jax: 0.10.0
libtpu: 0.0.40
codegen_flags: <defaults>
</compile_context>

<pallas_src>
import jax
import jax.numpy as jnp
from jax import lax
from jax.experimental import pallas as pl
from jax.experimental.pallas import tpu as pltpu


def _genblock_kernel(lhs_ref, w_ref, o_ref):
    # lhs_ref: (9*Cin, H*W)  bf16  im2col activations for one batch element
    # w_ref:   (Cout, 9*Cin) bf16  flattened spectral-normed conv weight
    # o_ref:   (Cout, H*W)   f32   (lane-dense: H*W on the lane axis)
    hw = o_ref.shape[-1]

    # 3x3 conv == one MXU matmul over the 9*Cin contraction, f32 accumulation.
    acc = lax.dot_general(
        w_ref[...], lhs_ref[...],
        dimension_numbers=(((1,), (0,)), ((), ())),
        preferred_element_type=jnp.float32,
    )  # (Cout, H*W) float32

    # InstanceNorm2d (affine=False, eps=1e-5, biased variance over H*W per
    # channel).  Single fused statistics pass: var = E[x^2] - E[x]^2.
    inv_hw = jnp.float32(1.0 / hw)
    s = jnp.sum(acc, axis=-1, keepdims=True)
    ss = jnp.sum(acc * acc, axis=-1, keepdims=True)
    mean = s * inv_hw
    var = jnp.maximum(ss * inv_hw - mean * mean, 0.0)
    y = (acc - mean) * lax.rsqrt(var + 1e-5)

    # LeakyReLU(0.2)
    y = jnp.where(y >= 0, y, 0.2 * y)

    o_ref[...] = y.astype(o_ref.dtype)


def gen_block_forward(x_nchw, weight_oihw, u):
    """GenBlock forward.

    x_nchw:      (N, Cin, H, W)     float32
    weight_oihw: (Cout, Cin, 3, 3)  float32  (raw weight_orig of spectral_norm)
    u:           (Cout,)            float32  (spectral-norm power-iteration vector)
    returns:     (N, Cout, H, W)    float32
    """
    Cout, Cin, KH, KW = weight_oihw.shape
    N, _, H, W = x_nchw.shape
    eps = 1e-12

    # --- spectral norm: one power iteration (training-mode forward), matching
    #     torch F.normalize's x / max(||x||, eps) semantics ---
    w_mat = weight_oihw.reshape(Cout, -1)
    v = w_mat.T @ u
    v = v / jnp.maximum(jnp.linalg.norm(v), eps)
    u_new = w_mat @ v
    u_new = u_new / jnp.maximum(jnp.linalg.norm(u_new), eps)
    sigma = u_new @ (w_mat @ v)
    w_sn = weight_oihw / sigma

    # --- layout plumbing (glue): reflect pad + im2col, tap-major (ky, kx, cin) ---
    x_pad = jnp.pad(x_nchw, ((0, 0), (0, 0), (1, 1), (1, 1)), mode="reflect")
    HW = H * W
    taps = []
    for ky in range(KH):
        for kx in range(KW):
            taps.append(x_pad[:, :, ky:ky + H, kx:kx + W].reshape(N, Cin, HW))
    lhs = jnp.concatenate(taps, axis=1).astype(jnp.bfloat16)      # (N, 9*Cin, H*W)

    # weight: OIHW -> (Cout, KH, KW, Cin) -> (Cout, 9*Cin), same tap ordering
    w_flat = (jnp.transpose(w_sn, (0, 2, 3, 1))
              .reshape(Cout, KH * KW * Cin)
              .astype(jnp.bfloat16))
    K9 = KH * KW * Cin

    cost = pl.CostEstimate(
        flops=2 * N * HW * K9 * Cout,
        transcendentals=N * Cout,                      # rsqrt per channel
        bytes_accessed=lhs.size * 2 + w_flat.size * 2 + N * Cout * HW * 4,
    )

    out = pl.pallas_call(
        _genblock_kernel,
        out_shape=jax.ShapeDtypeStruct((N, Cout, HW), x_nchw.dtype),
        grid_spec=pltpu.PrefetchScalarGridSpec(
            num_scalar_prefetch=0,
            grid=(N,),
            in_specs=[
                pl.BlockSpec((pl.Squeezed(), K9, HW), lambda n: (n, 0, 0)),
                pl.BlockSpec((Cout, K9), lambda n: (0, 0)),
            ],
            out_specs=pl.BlockSpec((pl.Squeezed(), Cout, HW), lambda n: (n, 0, 0)),
        ),
        compiler_params=pltpu.CompilerParams(dimension_semantics=("parallel",)),
        cost_estimate=cost,
    )(lhs, w_flat)

    return out.reshape(N, Cout, H, W)


if __name__ == "__main__":
    key = jax.random.PRNGKey(0)
    k_x, k_w, k_u = jax.random.split(key, 3)

    # small shapes consistent with the module
    N, Cin, H, W = 2, 4, 16, 16
    Cout = 8

    x = jax.random.normal(k_x, (N, Cin, H, W), jnp.float32)
    weight = jax.random.normal(k_w, (Cout, Cin, 3, 3), jnp.float32) * 0.1
    u = jax.random.normal(k_u, (Cout,), jnp.float32)
    u = u / (jnp.linalg.norm(u) + 1e-12)

    out = gen_block_forward(x, weight, u)
    jax.block_until_ready(out)
    assert out.shape == (N, Cout, H, W)
    print("KERNEL_OK")
</pallas_src>

<mosaic_0001>
module attributes {stable_mosaic.version = 11 : i64} {
  func.func @_genblock_kernel(%arg0: i32, %arg1: memref<1x36x256xbf16, #tpu.memory_space<vmem>>, %arg2: memref<8x36xbf16, #tpu.memory_space<vmem>>, %arg3: memref<1x8x256xf32, #tpu.memory_space<vmem>>) attributes {dimension_semantics = [#tpu.dimension_semantics<parallel>], iteration_bounds = array<i64: 2>, scalar_prefetch = 0 : i64, scratch_operands = 0 : i64, tpu.core_type = #tpu.core_type<tc>, window_params = [{transform_indices = @transform_0, window_bounds = array<i64: 1, 36, 256>}, {pipeline_mode = #tpu.pipeline_mode<synchronous>, transform_indices = @transform_1, window_bounds = array<i64: 8, 36>}, {transform_indices = @transform_2, window_bounds = array<i64: 1, 8, 256>}]} {
    %c0 = arith.constant 0 : index
    %c0_0 = arith.constant 0 : index
    %0 = vector.load %arg2[%c0, %c0_0] : memref<8x36xbf16, #tpu.memory_space<vmem>>, vector<8x36xbf16>
    %c0_1 = arith.constant 0 : index
    %c0_2 = arith.constant 0 : index
    %c0_3 = arith.constant 0 : index
    %1 = vector.load %arg1[%c0_1, %c0_2, %c0_3] : memref<1x36x256xbf16, #tpu.memory_space<vmem>>, vector<1x36x256xbf16>
    %2 = vector.shape_cast %1 : vector<1x36x256xbf16> to vector<36x256xbf16>
    %cst = arith.constant dense<0.000000e+00> : vector<8x256xf32>
    %3 = tpu.matmul %0, %2, %cst {dimension_numbers = #tpu.dot_dimension_numbers<[1], [0], [0], [1], [0, 0, 1, 1], [], []>} : vector<8x36xbf16>, vector<36x256xbf16>, vector<8x256xf32> -> vector<8x256xf32>
    %cst_4 = arith.constant dense<0.000000e+00> : vector<8xf32>
    %4 = vector.multi_reduction <add>, %3, %cst_4 [1] : vector<8x256xf32> to vector<8xf32>
    %5 = vector.shape_cast %4 : vector<8xf32> to vector<8x1xf32>
    %6 = arith.mulf %3, %3 : vector<8x256xf32>
    %cst_5 = arith.constant dense<0.000000e+00> : vector<8xf32>
    %7 = vector.multi_reduction <add>, %6, %cst_5 [1] : vector<8x256xf32> to vector<8xf32>
    %8 = vector.shape_cast %7 : vector<8xf32> to vector<8x1xf32>
    %cst_6 = arith.constant 3.906250e-03 : f32
    %9 = vector.broadcast %cst_6 : f32 to vector<8x1xf32>
    %10 = arith.mulf %5, %9 : vector<8x1xf32>
    %cst_7 = arith.constant 3.906250e-03 : f32
    %11 = vector.broadcast %cst_7 : f32 to vector<8x1xf32>
    %12 = arith.mulf %8, %11 : vector<8x1xf32>
    %13 = arith.mulf %10, %10 : vector<8x1xf32>
    %14 = arith.subf %12, %13 : vector<8x1xf32>
    %cst_8 = arith.constant 0.000000e+00 : f32
    %15 = vector.broadcast %cst_8 : f32 to vector<8x1xf32>
    %16 = arith.maximumf %14, %15 : vector<8x1xf32>
    %17 = vector.broadcast %10 : vector<8x1xf32> to vector<8x256xf32>
    %18 = arith.subf %3, %17 : vector<8x256xf32>
    %cst_9 = arith.constant 9.99999974E-6 : f32
    %19 = vector.broadcast %cst_9 : f32 to vector<8x1xf32>
    %20 = arith.addf %16, %19 : vector<8x1xf32>
    %21 = math.rsqrt %20 : vector<8x1xf32>
    %22 = vector.broadcast %21 : vector<8x1xf32> to vector<8x256xf32>
    %23 = arith.mulf %18, %22 : vector<8x256xf32>
    %cst_10 = arith.constant 0.000000e+00 : f32
    %24 = vector.broadcast %cst_10 : f32 to vector<8x256xf32>
    %25 = arith.cmpf oge, %23, %24 : vector<8x256xf32>
    %cst_11 = arith.constant 2.000000e-01 : f32
    %26 = vector.broadcast %cst_11 : f32 to vector<8x256xf32>
    %27 = arith.mulf %26, %23 : vector<8x256xf32>
    %28 = arith.select %25, %23, %27 : vector<8x256xi1>, vector<8x256xf32>
    %c0_12 = arith.constant 0 : index
    %c0_13 = arith.constant 0 : index
    %c0_14 = arith.constant 0 : index
    %29 = vector.load %arg3[%c0_12, %c0_13, %c0_14] : memref<1x8x256xf32, #tpu.memory_space<vmem>>, vector<1x8x256xf32>
    %30 = vector.shape_cast %29 : vector<1x8x256xf32> to vector<8x256xf32>
    %31 = vector.shape_cast %28 : vector<8x256xf32> to vector<1x8x256xf32>
    tpu.vector_store %arg3[%c0_12, %c0_13, %c0_14], %31 {strides = array<i32>} : memref<1x8x256xf32, #tpu.memory_space<vmem>>, vector<1x8x256xf32>,
    return
  }
  func.func @transform_0(%arg0: i32) -> (i32, i32, i32) {
    %c0_i32 = arith.constant 0 : i32
    %c0_i32_0 = arith.constant 0 : i32
    %c0_i32_1 = arith.constant 0 : i32
    return %arg0, %c0_i32, %c0_i32_0 : i32, i32, i32
  }
  func.func @transform_1(%arg0: i32) -> (i32, i32) {
    %c0_i32 = arith.constant 0 : i32
    %c0_i32_0 = arith.constant 0 : i32
    %c0_i32_1 = arith.constant 0 : i32
    return %c0_i32, %c0_i32_0 : i32, i32
  }
  func.func @transform_2(%arg0: i32) -> (i32, i32, i32) {
    %c0_i32 = arith.constant 0 : i32
    %c0_i32_0 = arith.constant 0 : i32
    %c0_i32_1 = arith.constant 0 : i32
    return %arg0, %c0_i32, %c0_i32_0 : i32, i32, i32
  }
}

</mosaic_0001>

<bundles_post_ra>
// kernel: tpu_custom_call.1
= control target key start
LH: loop header
LB: loop body
LE: loop exit
PB: predicated region body
PF: predicated region fallthrough
CT: control target
= control target key end

     0   :  { %7 = vsyncpa [#allocation3], 0  ;;  %s579_s0 = inlined_call_operand.vmem [shape: bf16[2,36,256], index: 0, kind: input, shape index: {}]   ;;  %s580_s1 = inlined_call_operand.vmem [shape: bf16[8,36], index: 1, kind: input, shape index: {}]   ;;  %s581_s2 = inlined_call_operand.hbm [shape: f32[2,8,256], index: 2, kind: output, shape index: {}]  }
   0x1   :  { %9 = vsyncpa [#allocation3 + $0x1], 0  ;;  %s477_s9 = smov 0   ;;  %s479_s10 = smov 0  }
   0x2   :  { %s481_s11 = smov 0   ;;  %s483_s12 = smov 0  }
   0x3 LB: > { %s498_s13 = sadd.s32 4294967295, %s458_s12   ;;  %s327_s14 = sadd.s32 4294967294, %s458_s12   ;;  %s458_s12 = sphi %s483_s12, %s587_s12   ;;  %s454_s11 = sphi %s481_s11, %s586_s11   ;;  %s450_s10 = sphi %s479_s10, %s585_s10   ;;  %s446_s9 = sphi %s477_s9, %s584_s9  }
   0x4   : > { %s502_s15 = sadd.s32 1, %s458_s12   ;;  %s69_s16 = sadd.s32 1, %s454_s11 }
   0x5   : > { %s66_s17 = ssub.s32 %s458_s12, %s502_s15  ;;  %p79_p0 = scmp.ne.s32.totalorder %s454_s11, %s450_s10 }
   0x6   : > { %p67_p1 = scmp.eq.s32.totalorder %s66_s17, 0  ;;  %p80_p2 = scmp.eq.s32.totalorder %s498_s13, 1 }
   0x7   : > { %p85_p3 = scmp.ne.s32.totalorder %s450_s10, %s446_s9  ;;  %p86_p4 = scmp.eq.s32.totalorder %s327_s14, 1 }
   0x8   : > { %s513_s18 = scalar_select %p67_p1, %s454_s11, %s69_s16  }
   0x9   : > { %p515_p5 = por %p80_p2, %p79_p0  ;;  %p519_p6 = por %p86_p4, %p85_p3 }
   0xa   : > { %p330_p7 = scmp.ge.s32.totalorder %s458_s12, 1  ;;  %p115_p8 = scmp.lt.s32.totalorder %s458_s12, 3 }
   0xc   : > { %p116_p9 = pnand %p330_p7, %p115_p8 }
   0xd   : > { %p137_p10 = scmp.lt.s32.totalorder (!%p116_p9), %s498_s13, 1  ;;  %s134_s28 = sand.u32 (!%p116_p9), 1, %s450_s10  }
   0xe   : > { %119 = sbr.rel (%p116_p9) target bundleno = 418 (0x1a2), region = 28  ;;  %s331_s29 = sshll.u32 (!%p116_p9), %s134_s28, 4 }
   0xf   : > { %s346_s30 = sshll.u32 (!%p116_p9), %s498_s13, 8  ;;  %s136_s3 = scalar_lea.vmem (!%p116_p9), [#allocation2], %s331_s29 }
  0x10   : > { %s268_s4 = sshll.u32 (!%p116_p9), %s136_s3, 4  ;;  %s538_s7 = scalar_lea.hbm (!%p116_p9), %s581_s2, %s346_s30  ;;  %s540_s4 = int_to_ptr.vmem [resolvable:$true] %s268_s4 }
  0x11   : > { %s254_s8 = scalar_lea.sflag (!%p116_p9), [#allocation3], %s134_s28  ;;  %s461_s14 = smov (!%p116_p9), [#allocation2]  }
  0x12   : > { %s402_s16 = sshll.u32 (!%p116_p9), %s461_s14, 4  ;;  %s403_s16 = int_to_ptr.vmem [resolvable:$false] %s402_s16 }
  0x13   : > { %v460_v0 = vmov 0   ;;  %s138_s21 = scalar_select %p137_p10, %s498_s13, 1  ;;  %vm178_vm0 = vcmask 1041408   ;;  %v143_v9 = vld [vmem:[%s580_s1] sm:$0xf]  ;;  %vm174_vm1 = vcmask 293888  }
  0x14   : > { %217 = vmatprep.mubr.bf16.mxu0 %v460_v0  ;;  %s398_s13 = scalar_lea.vmem %s540_s4, 256  ;;  %s404_s17 = scalar_lea.vmem %s403_s16, 512 }
  0x15   : > { %s347_s22 = smul.u32 40, %s138_s21  ;;  %p399_p11 = scmp.ne.s32.totalorder %s540_s4, %s398_s13 }
  0x16   : > { %p405_p0 = scmp.lt.s32.totalorder %s540_s4, %s403_s16  ;;  %p406_p1 = scmp.lt.s32.totalorder %s404_s17, %s398_s13 }
  0x17   : > { %s141_s25 = scalar_lea.vmem %s579_s0, %s347_s22  ;;  %p400_p12 = pnand %p399_p11, %p515_p5 }
  0x18   : > { %v148_v1 = vld [vmem:[%s141_s25 + $0x20] sm:$0x33]  ;;  %v390_v4 = vld [vmem:[%s141_s25 + $0x14] ss:$8 sps:$4 sm:$0xff]   ;;  %v392_v6 = vld [vmem:[%s141_s25 + $0x10] ss:$8 sps:$4 sm:$0xff]   ;;  %p407_p2 = por %p406_p1, %p405_p0 }
  0x19   : > { %v338_v2 = vcombine.high %v148_v1, %v148_v1  ;;  %v337_v3 = vcombine.low %v148_v1, %v148_v1  ;;  %v393_v7 = vld [vmem:[%s141_s25 + $0x4] ss:$8 sps:$4 sm:$0xff]   ;;  %v395_v8 = vld [vmem:[%s141_s25] ss:$8 sps:$4 sm:$0xff]   ;;  %p401_p13 = pneg %p400_p12 }
  0x1b   : > { %339 = vmatprep.subr.msk.bf16.mxu0 %vm178_vm0, %v338_v2  ;;  %v180_v5 = vsel %vm178_vm0, %v337_v3, 0  ;;  %p408_p3 = pnand %p407_p2, %p401_p13 }
  0x1c   : > { %196 = vmatpush1.bf16.msra.mxu0 %v180_v5 }
  0x1d   : > { %197 = vmatprep.subr.bf16.mxu0 %v390_v4 }
  0x20   : > { %198 = vmatpush1.bf16.msra.mxu0 %v392_v6 }
  0x21   : > { %199 = vmatprep.subr.bf16.mxu0 %v393_v7 }
  0x24   : > { %200 = vmatpush1.bf16.msra.mxu0 %v395_v8 }
  0x27   : > { %340 = vmatmul.mubr.msk.bf16.vlgmr.msra.gmra.mxu0 %vm174_vm1, %v143_v9 }
  0xe7   : > { %v219_v10 = vpop.f32.mrf.mxu0 }
  0xe8   : > { %v229_v15 = vmul.f32 %v219_v10, %v219_v10 }
  0xe9   : > { %v221_v11 = vpop.f32.mrf.mxu0 }
  0xea   : > { %v226_v12 = vadd.f32 %v221_v11, %v219_v10  ;;  %v230_v13 = vmul.f32 %v221_v11, %v221_v11 }
  0xeb   : > { %v223_v14 = vpop.f32.mrf.mxu0 }
  0xec   : > { %227 = vadd.xlane.f32.xlu0 %v226_v12  ;;  %v231_v17 = vadd.f32 %v230_v13, %v229_v15 }
  0xed   : > { %v224_v16 = vpop.f32.mrf.mxu0 }
  0xf0   : > { %232 = vadd.xlane.f32.xlu0 %v231_v17 }
 0x175   : > { %v228_v18 = vpop.xlane.xlu0 %227 }
 0x176   : > { %v234_v19 = vmul.f32 0.00390625, %v228_v18 }
 0x178   : > { %v236_v21 = vmul.f32 %v234_v19, %v234_v19  ;;  %v239_v26 = vsub.f32 %v219_v10, %v234_v19  ;;  %v240_v27 = vsub.f32 %v221_v11, %v234_v19 }
 0x179   : > { %v233_v20 = vpop.xlane.xlu0 %232 }
 0x17a   : > { %v235_v22 = vmul.f32 0.00390625, %v233_v20 }
 0x17c   : > { %v237_v23 = vsub.f32 %v235_v22, %v236_v21 }
 0x17e   : > { %v238_v24 = vmax.f32 %v237_v23, 0.0 }
 0x180   : > { %v241_v25 = vadd.f32 1e-05, %v238_v24 }
 0x182   : > { %396 = vrsqrt.f32 %v241_v25 }
 0x18f   : > { %v397_v28 = vpop.eup %396 }
 0x190   : > { %v243_v29 = vmul.f32 %v397_v28, %v239_v26  ;;  %v244_v30 = vmul.f32 %v397_v28, %v240_v27 }
 0x192   : > { %vm245_vm2 = vcmp.ge.f32.partialorder %v243_v29, 0.0  ;;  %vm246_vm3 = vcmp.ge.f32.partialorder %v244_v30, 0.0  ;;  %v247_v31 = vmul.f32 0.2, %v243_v29  ;;  %v248_v32 = vmul.f32 0.2, %v244_v30 }
 0x194   : > { %v249_v33 = vsel %vm245_vm2, %v243_v29, %v247_v31  ;;  %v250_v34 = vsel %vm246_vm3, %v244_v30, %v248_v32 }
 0x195   : > { %251 = vst [vmem:[%s136_s3] sm:$0xff] %v249_v33  ;;  %252 = vst [vmem:[%s136_s3 + $0x8] sm:$0xff] %v250_v34 }
 0x196   : > { %411 = shalt.err (!%p408_p3)
}
 0x197   : > { %s412_s21 = scalar_lea.hbm %s538_s7, 256  ;;  %s416_s24 = scalar_lea.hbm %s581_s2, 512 }
 0x198   : > { %p413_p4 = scmp.ne.s32.totalorder %s538_s7, %s412_s21  ;;  %p417_p9 = scmp.lt.s32.totalorder %s538_s7, %s581_s2 }
 0x199   : > { %p418_p10 = scmp.lt.s32.totalorder %s416_s24, %s412_s21 }
 0x19a   : > { %p414_p7 = pnand %p413_p4, %p515_p5 }
 0x19b   : > { %p419_p11 = por %p418_p10, %p417_p9 }
 0x19c   : > { %p415_p8 = pneg %p414_p7 }
 0x19e   : > { %p420_p12 = pnand %p419_p11, %p415_p8 }
 0x1a0   : > { %423 = shalt.err (!%p420_p12)
}
 0x1a1   : > { %348 = dma.vmem_to_hbm [thread:$0]  (%p515_p5), %s540_s4, 256, %s538_s7, %s254_s8  }
 0x1a2 PF: > { %p354_p13 = scmp.ge.s32.totalorder %s458_s12, 2  ;;  %s280_s27 = sand.u32 1, %s446_s9  }
 0x1a3   : > { %s281_s28 = scalar_lea.sflag [#allocation3], %s280_s27 }
 0x1a4   : > { %p351_p0 = pnand %p354_p13, %p519_p6 }
 0x1a6   : > { %p352_p1 = pneg %p351_p0 }
 0x1a8   : > { %441 = dma.done.wait (%p352_p1), %s281_s28, 256  }
 0x1a9   : > { %443 = vsyncadd (%p352_p1), %s281_s28, 4294967040  ;;  %p12_p2 = scmp.ge.s32.totalorder %s502_s15, 4   ;;  %s584_s9 = smov %s450_s10 }
 0x1aa   : > { %s585_s10 = smov %s454_s11  ;;  %s586_s11 = smov %s513_s18 }
 0x1ab   : > { %s587_s12 = smov %s502_s15  ;;  %14 = sbr.rel (!%p12_p2) target bundleno = 3 (0x3), region = 63 }
 0x1b0   :  { %286 = vsyncpa [#allocation3], 1 }
 0x1b1   :  { %288 = vsyncpa [#allocation3 + $0x1], 1 }

</bundles_post_ra>
